<compile_context>
chip_gen: v5e
topology: v5e:2x2
jax: 0.10.0
libtpu: 0.0.40
codegen_flags: <defaults>
</compile_context>

<pallas_src>
import jax
import jax.numpy as jnp
from jax.experimental import pallas as pl
from jax.experimental.pallas import tpu as pltpu


def _round_up(n, m):
    return (n + m - 1) // m * m


def _pad2(a, rows, cols):
    r, c = a.shape
    return jnp.pad(a, ((0, rows - r), (0, cols - c)))


def mlp_kernel(x_ref, w1_ref, w2_ref, b2_ref, w3_ref, b3_ref,
               w4_ref, b4_ref, w5_ref, b5_ref, o_ref):
    cdt = w1_ref.dtype  # compute dtype for MXU inputs (bf16 default, f32 debug)

    x = x_ref[...]
    # layer_1: Linear(input_dim, hidden, bias=False) + relu
    h = jnp.dot(x, w1_ref[...], preferred_element_type=jnp.float32)
    h = jnp.maximum(h, 0.0)
    # layer_2: Linear(hidden, hidden) + relu   (bias add / relu stay in f32)
    h = jnp.dot(h.astype(cdt), w2_ref[...],
                preferred_element_type=jnp.float32) + b2_ref[...]
    h = jnp.maximum(h, 0.0)
    # layer_3: Linear(hidden, hidden) + relu
    h = jnp.dot(h.astype(cdt), w3_ref[...],
                preferred_element_type=jnp.float32) + b3_ref[...]
    h = jnp.maximum(h, 0.0)
    # layer_4: Linear(hidden, hidden) + sigmoid, as a single EUP transcendental:
    # sigmoid(h) == 0.5 * tanh(0.5 * h) + 0.5
    h = jnp.dot(h.astype(cdt), w4_ref[...],
                preferred_element_type=jnp.float32) + b4_ref[...]
    h = 0.5 * jnp.tanh(0.5 * h) + 0.5
    # layer_5: Linear(hidden, output_dim) -> narrow (TB, out_dim) store.
    o_ref[...] = (jnp.dot(h.astype(cdt), w5_ref[...],
                          preferred_element_type=jnp.float32)
                  + b5_ref[...]).astype(o_ref.dtype)


def mlp_forward(x, params, *, compute_dtype=jnp.bfloat16):
    """x: [B, input_dim] f32. params: dict of transposed weights / biases (f32)."""
    B, in_dim = x.shape
    H = params["w1"].shape[1]
    out_dim = params["w5"].shape[1]

    # Only the hidden dim is padded lane-dense (32 -> 128). Input / output
    # feature dims are kept at their real widths (blocks spanning the full
    # array dim are legal and avoid 32x/64x HBM amplification).
    H_P = _round_up(H, 128)

    # Batch tile: big enough to amortize per-grid-step overhead, multiple of 8,
    # and chosen so the grid has >= 2 steps (megacore sharding on v7x).
    TB = min(1024, max(8, _round_up(-(-B // 2), 8)))
    B_P = _round_up(B, TB)
    if B_P // TB < 2:
        B_P = 2 * TB

    cdt = compute_dtype
    xp = _pad2(x, B_P, in_dim).astype(cdt)
    w1 = _pad2(params["w1"], in_dim, H_P).astype(cdt)
    w2 = _pad2(params["w2"], H_P, H_P).astype(cdt)
    w3 = _pad2(params["w3"], H_P, H_P).astype(cdt)
    w4 = _pad2(params["w4"], H_P, H_P).astype(cdt)
    # w5 padded only along K (sublane). Padded rows are zero, so the
    # sigmoid(0)=0.5 values on padded hidden lanes of layer_4 never leak out.
    w5 = _pad2(params["w5"], H_P, out_dim).astype(cdt)
    # Biases stay f32: they are added to the f32 MXU accumulator, and padded
    # columns are zero so padded lanes stay exactly 0 through the relu layers.
    b2 = _pad2(params["b2"], 1, H_P).astype(jnp.float32)
    b3 = _pad2(params["b3"], 1, H_P).astype(jnp.float32)
    b4 = _pad2(params["b4"], 1, H_P).astype(jnp.float32)
    b5 = params["b5"].astype(jnp.float32)  # (1, out_dim), no padding needed

    grid = (B_P // TB,)

    def resident(shape):
        # Constant block index across the grid -> loaded once, stays in VMEM.
        return pl.BlockSpec(shape, lambda i: (0, 0))

    in_specs = [
        pl.BlockSpec((TB, in_dim), lambda i: (i, 0)),   # x: tiled over batch
        resident((in_dim, H_P)),                        # w1
        resident((H_P, H_P)), resident((1, H_P)),       # w2, b2
        resident((H_P, H_P)), resident((1, H_P)),       # w3, b3
        resident((H_P, H_P)), resident((1, H_P)),       # w4, b4
        resident((H_P, out_dim)), resident((1, out_dim)),  # w5, b5
    ]
    out_specs = pl.BlockSpec((TB, out_dim), lambda i: (i, 0))

    # VMEM budget: resident weights + biases + double-buffered x/out tiles +
    # f32 activations, clamped to v7x's 64 MiB physical VMEM per TensorCore.
    itemsize = jnp.dtype(cdt).itemsize
    weight_bytes = (in_dim * H_P + 3 * H_P * H_P + H_P * out_dim) * itemsize * 2
    bias_bytes = (3 * H_P + out_dim) * 4
    io_bytes = 2 * TB * (in_dim * itemsize + out_dim * 4)
    act_bytes = 6 * TB * H_P * 4
    vmem_limit = int(1.25 * (weight_bytes + bias_bytes + io_bytes + act_bytes)) + (4 << 20)
    vmem_limit = max(16 << 20, min(vmem_limit, 64 << 20))

    out_padded = pl.pallas_call(
        mlp_kernel,
        out_shape=jax.ShapeDtypeStruct((B_P, out_dim), jnp.float32),
        grid=grid,
        in_specs=in_specs,
        out_specs=out_specs,
        compiler_params=pltpu.CompilerParams(
            dimension_semantics=("parallel",),
            vmem_limit_bytes=vmem_limit,
        ),
    )(xp, w1, w2, b2, w3, b3, w4, b4, w5, b5)

    return out_padded[:B]


def init_params(key, input_dim, hidden_dim, output_dim):
    """Deterministic synthetic init mirroring the PyTorch module's shapes.

    PyTorch stores Linear weight as (out, in); we keep the transposed (in, out)
    form so the kernel does x @ W directly. Layers 1-4 use trunc_normal(std=1,
    a=-2, b=2); layer 5 and biases use the PyTorch default uniform(+-1/sqrt(fan_in)).
    """
    ks = jax.random.split(key, 9)

    def trunc(k, shape):
        return jax.random.truncated_normal(k, -2.0, 2.0, shape, jnp.float32)

    def uniform(k, shape, fan_in):
        bound = 1.0 / jnp.sqrt(fan_in)
        return jax.random.uniform(k, shape, jnp.float32, -bound, bound)

    return {
        # transposed: (in, out)
        "w1": trunc(ks[0], (input_dim, hidden_dim)),
        "w2": trunc(ks[1], (hidden_dim, hidden_dim)),
        "b2": uniform(ks[2], (1, hidden_dim), hidden_dim),
        "w3": trunc(ks[3], (hidden_dim, hidden_dim)),
        "b3": uniform(ks[4], (1, hidden_dim), hidden_dim),
        "w4": trunc(ks[5], (hidden_dim, hidden_dim)),
        "b4": uniform(ks[6], (1, hidden_dim), hidden_dim),
        "w5": uniform(ks[7], (hidden_dim, output_dim), hidden_dim),
        "b5": uniform(ks[8], (1, output_dim), hidden_dim),
    }


def mlp_reference(x, p):
    h = jnp.maximum(x @ p["w1"], 0.0)
    h = jnp.maximum(h @ p["w2"] + p["b2"], 0.0)
    h = jnp.maximum(h @ p["w3"] + p["b3"], 0.0)
    h = jax.nn.sigmoid(h @ p["w4"] + p["b4"])
    return h @ p["w5"] + p["b5"]


def mlp_reference_bf16(x, p):
    c = jnp.bfloat16

    def dot(a, b):
        return jnp.dot(a.astype(c), b.astype(c), preferred_element_type=jnp.float32)

    h = jnp.maximum(dot(x, p["w1"]), 0.0)
    h = jnp.maximum(dot(h, p["w2"]) + p["b2"], 0.0)
    h = jnp.maximum(dot(h, p["w3"]) + p["b3"], 0.0)
    h = jax.nn.sigmoid(dot(h, p["w4"]) + p["b4"])
    return dot(h, p["w5"]) + p["b5"]


if __name__ == "__main__":
    key = jax.random.PRNGKey(0)
    k_x, k_p = jax.random.split(key)

    batch, input_dim, hidden_dim, output_dim = 8, 4, 32, 2
    x = jax.random.normal(k_x, (batch, input_dim), jnp.float32)
    params = init_params(k_p, input_dim, hidden_dim, output_dim)

    # Default bf16 MXU path: compared against a bf16-input / f32-accumulate ref.
    out_bf16 = mlp_forward(x, params)
    jax.block_until_ready(out_bf16)
    ref_bf16 = mlp_reference_bf16(x, params)
    assert out_bf16.shape == (batch, output_dim)
    assert jnp.allclose(out_bf16, ref_bf16, atol=5e-3, rtol=5e-3)

    # f32 debug path: tight match against the plain-JAX reference.
    out_f32 = mlp_forward(x, params, compute_dtype=jnp.float32)
    jax.block_until_ready(out_f32)
    ref_f32 = mlp_reference(x, params)
    assert out_f32.shape == (batch, output_dim)
    assert jnp.allclose(out_f32, ref_f32, atol=1e-5, rtol=1e-5)

    print("KERNEL_OK")
</pallas_src>

<mosaic_0001>
module attributes {stable_mosaic.version = 11 : i64} {
  func.func @mlp_kernel(%arg0: i32, %arg1: memref<8x4xbf16, #tpu.memory_space<vmem>>, %arg2: memref<4x128xbf16, #tpu.memory_space<vmem>>, %arg3: memref<128x128xbf16, #tpu.memory_space<vmem>>, %arg4: memref<1x128xf32, #tpu.memory_space<vmem>>, %arg5: memref<128x128xbf16, #tpu.memory_space<vmem>>, %arg6: memref<1x128xf32, #tpu.memory_space<vmem>>, %arg7: memref<128x128xbf16, #tpu.memory_space<vmem>>, %arg8: memref<1x128xf32, #tpu.memory_space<vmem>>, %arg9: memref<128x2xbf16, #tpu.memory_space<vmem>>, %arg10: memref<1x2xf32, #tpu.memory_space<vmem>>, %arg11: memref<8x2xf32, #tpu.memory_space<vmem>>) attributes {dimension_semantics = [#tpu.dimension_semantics<parallel>], iteration_bounds = array<i64: 2>, scalar_prefetch = 0 : i64, scratch_operands = 0 : i64, tpu.core_type = #tpu.core_type<tc>, window_params = [{transform_indices = @transform_0, window_bounds = array<i64: 8, 4>}, {pipeline_mode = #tpu.pipeline_mode<synchronous>, transform_indices = @transform_1, window_bounds = array<i64: 4, 128>}, {pipeline_mode = #tpu.pipeline_mode<synchronous>, transform_indices = @transform_2, window_bounds = array<i64: 128, 128>}, {pipeline_mode = #tpu.pipeline_mode<synchronous>, transform_indices = @transform_3, window_bounds = array<i64: 1, 128>}, {pipeline_mode = #tpu.pipeline_mode<synchronous>, transform_indices = @transform_4, window_bounds = array<i64: 128, 128>}, {pipeline_mode = #tpu.pipeline_mode<synchronous>, transform_indices = @transform_5, window_bounds = array<i64: 1, 128>}, {pipeline_mode = #tpu.pipeline_mode<synchronous>, transform_indices = @transform_6, window_bounds = array<i64: 128, 128>}, {pipeline_mode = #tpu.pipeline_mode<synchronous>, transform_indices = @transform_7, window_bounds = array<i64: 1, 128>}, {pipeline_mode = #tpu.pipeline_mode<synchronous>, transform_indices = @transform_8, window_bounds = array<i64: 128, 2>}, {pipeline_mode = #tpu.pipeline_mode<synchronous>, transform_indices = @transform_9, window_bounds = array<i64: 1, 2>}, {transform_indices = @transform_10, window_bounds = array<i64: 8, 2>}]} {
    %c0 = arith.constant 0 : index
    %c0_0 = arith.constant 0 : index
    %0 = vector.load %arg1[%c0, %c0_0] : memref<8x4xbf16, #tpu.memory_space<vmem>>, vector<8x4xbf16>
    %c0_1 = arith.constant 0 : index
    %c0_2 = arith.constant 0 : index
    %1 = vector.load %arg2[%c0_1, %c0_2] : memref<4x128xbf16, #tpu.memory_space<vmem>>, vector<4x128xbf16>
    %cst = arith.constant dense<0.000000e+00> : vector<8x128xf32>
    %2 = tpu.matmul %0, %1, %cst {dimension_numbers = #tpu.dot_dimension_numbers<[1], [0], [0], [1], [0, 0, 1, 1], [], []>} : vector<8x4xbf16>, vector<4x128xbf16>, vector<8x128xf32> -> vector<8x128xf32>
    %cst_3 = arith.constant 0.000000e+00 : f32
    %3 = vector.broadcast %cst_3 : f32 to vector<8x128xf32>
    %4 = arith.maximumf %2, %3 : vector<8x128xf32>
    %5 = arith.truncf %4 : vector<8x128xf32> to vector<8x128xbf16>
    %c0_4 = arith.constant 0 : index
    %c0_5 = arith.constant 0 : index
    %6 = vector.load %arg3[%c0_4, %c0_5] : memref<128x128xbf16, #tpu.memory_space<vmem>>, vector<128x128xbf16>
    %cst_6 = arith.constant dense<0.000000e+00> : vector<8x128xf32>
    %7 = tpu.matmul %5, %6, %cst_6 {dimension_numbers = #tpu.dot_dimension_numbers<[1], [0], [0], [1], [0, 0, 1, 1], [], []>} : vector<8x128xbf16>, vector<128x128xbf16>, vector<8x128xf32> -> vector<8x128xf32>
    %c0_7 = arith.constant 0 : index
    %c0_8 = arith.constant 0 : index
    %8 = vector.load %arg4[%c0_7, %c0_8] : memref<1x128xf32, #tpu.memory_space<vmem>>, vector<1x128xf32>
    %9 = vector.broadcast %8 : vector<1x128xf32> to vector<8x128xf32>
    %10 = arith.addf %7, %9 : vector<8x128xf32>
    %cst_9 = arith.constant 0.000000e+00 : f32
    %11 = vector.broadcast %cst_9 : f32 to vector<8x128xf32>
    %12 = arith.maximumf %10, %11 : vector<8x128xf32>
    %13 = arith.truncf %12 : vector<8x128xf32> to vector<8x128xbf16>
    %c0_10 = arith.constant 0 : index
    %c0_11 = arith.constant 0 : index
    %14 = vector.load %arg5[%c0_10, %c0_11] : memref<128x128xbf16, #tpu.memory_space<vmem>>, vector<128x128xbf16>
    %cst_12 = arith.constant dense<0.000000e+00> : vector<8x128xf32>
    %15 = tpu.matmul %13, %14, %cst_12 {dimension_numbers = #tpu.dot_dimension_numbers<[1], [0], [0], [1], [0, 0, 1, 1], [], []>} : vector<8x128xbf16>, vector<128x128xbf16>, vector<8x128xf32> -> vector<8x128xf32>
    %c0_13 = arith.constant 0 : index
    %c0_14 = arith.constant 0 : index
    %16 = vector.load %arg6[%c0_13, %c0_14] : memref<1x128xf32, #tpu.memory_space<vmem>>, vector<1x128xf32>
    %17 = vector.broadcast %16 : vector<1x128xf32> to vector<8x128xf32>
    %18 = arith.addf %15, %17 : vector<8x128xf32>
    %cst_15 = arith.constant 0.000000e+00 : f32
    %19 = vector.broadcast %cst_15 : f32 to vector<8x128xf32>
    %20 = arith.maximumf %18, %19 : vector<8x128xf32>
    %21 = arith.truncf %20 : vector<8x128xf32> to vector<8x128xbf16>
    %c0_16 = arith.constant 0 : index
    %c0_17 = arith.constant 0 : index
    %22 = vector.load %arg7[%c0_16, %c0_17] : memref<128x128xbf16, #tpu.memory_space<vmem>>, vector<128x128xbf16>
    %cst_18 = arith.constant dense<0.000000e+00> : vector<8x128xf32>
    %23 = tpu.matmul %21, %22, %cst_18 {dimension_numbers = #tpu.dot_dimension_numbers<[1], [0], [0], [1], [0, 0, 1, 1], [], []>} : vector<8x128xbf16>, vector<128x128xbf16>, vector<8x128xf32> -> vector<8x128xf32>
    %c0_19 = arith.constant 0 : index
    %c0_20 = arith.constant 0 : index
    %24 = vector.load %arg8[%c0_19, %c0_20] : memref<1x128xf32, #tpu.memory_space<vmem>>, vector<1x128xf32>
    %25 = vector.broadcast %24 : vector<1x128xf32> to vector<8x128xf32>
    %26 = arith.addf %23, %25 : vector<8x128xf32>
    %cst_21 = arith.constant 5.000000e-01 : f32
    %27 = vector.broadcast %cst_21 : f32 to vector<8x128xf32>
    %28 = arith.mulf %27, %26 : vector<8x128xf32>
    %29 = math.tanh %28 : vector<8x128xf32>
    %cst_22 = arith.constant 5.000000e-01 : f32
    %30 = vector.broadcast %cst_22 : f32 to vector<8x128xf32>
    %31 = arith.mulf %30, %29 : vector<8x128xf32>
    %cst_23 = arith.constant 5.000000e-01 : f32
    %32 = vector.broadcast %cst_23 : f32 to vector<8x128xf32>
    %33 = arith.addf %31, %32 : vector<8x128xf32>
    %34 = arith.truncf %33 : vector<8x128xf32> to vector<8x128xbf16>
    %c0_24 = arith.constant 0 : index
    %c0_25 = arith.constant 0 : index
    %35 = vector.load %arg9[%c0_24, %c0_25] : memref<128x2xbf16, #tpu.memory_space<vmem>>, vector<128x2xbf16>
    %cst_26 = arith.constant dense<0.000000e+00> : vector<8x2xf32>
    %36 = tpu.matmul %34, %35, %cst_26 {dimension_numbers = #tpu.dot_dimension_numbers<[1], [0], [0], [1], [0, 0, 1, 1], [], []>} : vector<8x128xbf16>, vector<128x2xbf16>, vector<8x2xf32> -> vector<8x2xf32>
    %c0_27 = arith.constant 0 : index
    %c0_28 = arith.constant 0 : index
    %37 = vector.load %arg10[%c0_27, %c0_28] : memref<1x2xf32, #tpu.memory_space<vmem>>, vector<1x2xf32>
    %38 = vector.broadcast %37 : vector<1x2xf32> to vector<8x2xf32>
    %39 = arith.addf %36, %38 : vector<8x2xf32>
    %c0_29 = arith.constant 0 : index
    %c0_30 = arith.constant 0 : index
    %40 = vector.load %arg11[%c0_29, %c0_30] : memref<8x2xf32, #tpu.memory_space<vmem>>, vector<8x2xf32>
    tpu.vector_store %arg11[%c0_29, %c0_30], %39 {strides = array<i32>} : memref<8x2xf32, #tpu.memory_space<vmem>>, vector<8x2xf32>,
    return
  }
  func.func @transform_0(%arg0: i32) -> (i32, i32) {
    %c0_i32 = arith.constant 0 : i32
    %c0_i32_0 = arith.constant 0 : i32
    return %arg0, %c0_i32 : i32, i32
  }
  func.func @transform_1(%arg0: i32) -> (i32, i32) {
    %c0_i32 = arith.constant 0 : i32
    %c0_i32_0 = arith.constant 0 : i32
    %c0_i32_1 = arith.constant 0 : i32
    return %c0_i32, %c0_i32_0 : i32, i32
  }
  func.func @transform_2(%arg0: i32) -> (i32, i32) {
    %c0_i32 = arith.constant 0 : i32
    %c0_i32_0 = arith.constant 0 : i32
    %c0_i32_1 = arith.constant 0 : i32
    return %c0_i32, %c0_i32_0 : i32, i32
  }
  func.func @transform_3(%arg0: i32) -> (i32, i32) {
    %c0_i32 = arith.constant 0 : i32
    %c0_i32_0 = arith.constant 0 : i32
    %c0_i32_1 = arith.constant 0 : i32
    return %c0_i32, %c0_i32_0 : i32, i32
  }
  func.func @transform_4(%arg0: i32) -> (i32, i32) {
    %c0_i32 = arith.constant 0 : i32
    %c0_i32_0 = arith.constant 0 : i32
    %c0_i32_1 = arith.constant 0 : i32
    return %c0_i32, %c0_i32_0 : i32, i32
  }
  func.func @transform_5(%arg0: i32) -> (i32, i32) {
    %c0_i32 = arith.constant 0 : i32
    %c0_i32_0 = arith.constant 0 : i32
    %c0_i32_1 = arith.constant 0 : i32
    return %c0_i32, %c0_i32_0 : i32, i32
  }
  func.func @transform_6(%arg0: i32) -> (i32, i32) {
    %c0_i32 = arith.constant 0 : i32
    %c0_i32_0 = arith.constant 0 : i32
    %c0_i32_1 = arith.constant 0 : i32
    return %c0_i32, %c0_i32_0 : i32, i32
  }
  func.func @transform_7(%arg0: i32) -> (i32, i32) {
    %c0_i32 = arith.constant 0 : i32
    %c0_i32_0 = arith.constant 0 : i32
    %c0_i32_1 = arith.constant 0 : i32
    return %c0_i32, %c0_i32_0 : i32, i32
  }
  func.func @transform_8(%arg0: i32) -> (i32, i32) {
    %c0_i32 = arith.constant 0 : i32
    %c0_i32_0 = arith.constant 0 : i32
    %c0_i32_1 = arith.constant 0 : i32
    return %c0_i32, %c0_i32_0 : i32, i32
  }
  func.func @transform_9(%arg0: i32) -> (i32, i32) {
    %c0_i32 = arith.constant 0 : i32
    %c0_i32_0 = arith.constant 0 : i32
    %c0_i32_1 = arith.constant 0 : i32
    return %c0_i32, %c0_i32_0 : i32, i32
  }
  func.func @transform_10(%arg0: i32) -> (i32, i32) {
    %c0_i32 = arith.constant 0 : i32
    %c0_i32_0 = arith.constant 0 : i32
    return %arg0, %c0_i32 : i32, i32
  }
}

</mosaic_0001>

<bundles_post_ra>
// kernel: tpu_custom_call.1
= control target key start
LH: loop header
LB: loop body
LE: loop exit
PB: predicated region body
PF: predicated region fallthrough
CT: control target
= control target key end

     0   :  { %15 = vsyncpa [#allocation3], 0  ;;  %s1274_s0 = inlined_call_operand.vmem [shape: bf16[16,4], index: 0, kind: input, shape index: {}]   ;;  %s1275_s1 = inlined_call_operand.vmem [shape: bf16[4,128], index: 1, kind: input, shape index: {}]   ;;  %s1276_s2 = inlined_call_operand.vmem [shape: bf16[128,128], index: 2, kind: input, shape index: {}]   ;;  %s1277_s3 = inlined_call_operand.vmem [shape: f32[1,128], index: 3, kind: input, shape index: {}]   ;;  %s1278_s4 = inlined_call_operand.hbm [shape: bf16[128,128], index: 4, kind: input, shape index: {}]   ;;  %s1279_s5 = inlined_call_operand.vmem [shape: f32[1,128], index: 5, kind: input, shape index: {}]   ;;  %s1280_s6 = inlined_call_operand.hbm [shape: bf16[128,128], index: 6, kind: input, shape index: {}]   ;;  %s1281_s7 = inlined_call_operand.vmem [shape: f32[1,128], index: 7, kind: input, shape index: {}]   ;;  %s1282_s8 = inlined_call_operand.vmem [shape: bf16[128,2], index: 8, kind: input, shape index: {}]   ;;  %s1283_s9 = inlined_call_operand.vmem [shape: f32[1,2], index: 9, kind: input, shape index: {}]   ;;  %s1284_s10 = inlined_call_operand.vmem [shape: f32[16,2], index: 10, kind: output, shape index: {}]  }
   0x1   :  { %16 = vsyncpa [#allocation5], 0  ;;  %s1171_s13 = smov 0  }
   0x2 LB: > { %s288_s16 = sshll.u32 %s1278_s4, 4  ;;  %s825_s17 = sadd.s32 4294967295, %s1110_s13   ;;  %s1110_s13 = sphi %s1171_s13, %s22_s13   ;;  %s289_s16 = int_to_ptr.hbm [resolvable:$true] %s288_s16 }
   0x3   : > { %p827_p0 = scmp.ge.s32.totalorder %s1110_s13, 1  ;;  %p268_p1 = scmp.lt.s32.totalorder %s1110_s13, 3 }
   0x4   : > { %p1014_p2 = scmp.eq.s32.totalorder %s825_s17, 0  ;;  %s1112_s19 = smov [#allocation2]  }
   0x5   : > { %p1182_p3 = pnand %p827_p0, %p268_p1  ;;  %s290_s20 = sshll.u32 %s1112_s19, 4  ;;  %s291_s20 = int_to_ptr.vmem [resolvable:$true] %s290_s20 }
   0x6   : > { %s305_s23 = sshll.u32 %s1280_s6, 4  ;;  %s1113_s24 = smov [#allocation4]   ;;  %s306_s23 = int_to_ptr.hbm [resolvable:$true] %s305_s23 }
   0x7   : > { %p1007_p4 = pneg %p1182_p3  ;;  %s307_s25 = sshll.u32 %s1113_s24, 4  ;;  %s308_s25 = int_to_ptr.vmem [resolvable:$true] %s307_s25 }
   0x8   : > { %s1114_s26 = smov 64   ;;  %s1115_s27 = smov 4  }
   0x9   : > { %p1008_p5 = pnand %p1014_p2, %p1007_p4  ;;  %339 = sbr.rel (%p1182_p3) target bundleno = 706 (0x2c2), region = 60 }
   0xb   : > { %1010 = dma.hbm_to_vmem [thread:$0]  (!%p1008_p5), %s289_s16, 1024, %s291_s20, [#allocation3], %s1114_s26, %s1114_s26, %s1115_s27  }
   0xc   : > { %1013 = dma.hbm_to_vmem [thread:$0]  (!%p1008_p5), %s306_s23, 1024, %s308_s25, [#allocation5], %s1114_s26, %s1114_s26, %s1115_s27  }
   0xe   : > { %1101 = dma.done.wait (%p1014_p2), [#allocation3], 1024  }
   0xf   : > { %1103 = vsyncadd (%p1014_p2), [#allocation3], 4294966272 }
  0x10   : > { %1105 = dma.done.wait (%p1014_p2), [#allocation5], 1024  }
  0x11   : > { %1107 = vsyncadd (%p1014_p2), [#allocation5], 4294966272  ;;  %p381_p6 = scmp.lt.s32.totalorder %s825_s17, 1  ;;  %vm396_vm0 = vcmask 1041408   ;;  %v391_v0 = vld [vmem:[%s1275_s1] sm:$0x3] }
  0x12   : > { %v974_v1 = vld [vmem:[%s1276_s2 + $0x38] sm:$0xff]  ;;  %v398_v2 = vsel %vm396_vm0, %v391_v0, 0  ;;  %vm392_vm1 = vcmask 31744   ;;  %v973_v4 = vld [vmem:[%s1276_s2 + $0x30] sm:$0xff]  ;;  %v972_v5 = vld [vmem:[%s1276_s2 + $0x28] sm:$0xff]  ;;  %vm748_vm2 = vcmask 15360  }
  0x13   : > { %s1287_s17 = smov (!%p381_p6, %s825_s17), 1  ;;  %407 = vmatpush.bf16.msra.mxu0 %v398_v2  ;;  %483 = vmatpush.bf16.msra.mxu1 %v974_v1  ;;  %v971_v6 = vld [vmem:[%s1276_s2 + $0x20] sm:$0xff]  ;;  %v970_v7 = vld [vmem:[%s1276_s2 + $0x18] sm:$0xff]  ;;  %v969_v8 = vld [vmem:[%s1276_s2 + $0x10] sm:$0xff] }
  0x14   : > { %s834_s28 = sshll.u32 %s1287_s17, 2  ;;  %v968_v9 = vld [vmem:[%s1276_s2 + $0x8] sm:$0xff]  ;;  %v967_v10 = vld [vmem:[%s1276_s2] sm:$0xff]  ;;  %v982_v11 = vld [vmem:[#allocation2 + $0x38] sm:$0xff]  ;;  %s835_s18 = sshll.u32 %s1287_s17, 3 }
  0x15   : > { %s384_s11 = scalar_lea.vmem %s1274_s0, %s834_s28  ;;  %566 = vmatpush.bf16.msra.mxu2 %v982_v11  ;;  %v981_v12 = vld [vmem:[#allocation2 + $0x30] sm:$0xff]  ;;  %v980_v13 = vld [vmem:[#allocation2 + $0x28] sm:$0xff]  ;;  %v979_v14 = vld [vmem:[#allocation2 + $0x20] sm:$0xff]  ;;  %s388_s23 = scalar_lea.vmem %s1284_s10, %s835_s18 }
  0x16   : > { %v390_v3 = vld [vmem:[%s384_s11] sm:$0xf]  ;;  %v978_v15 = vld [vmem:[#allocation2 + $0x18] sm:$0xff]  ;;  %v977_v16 = vld [vmem:[#allocation2 + $0x10] sm:$0xff] }
  0x17   : > { %836 = vmatmul.msk.bf16.vlgmr.msra.gmra.mxu0 %vm392_vm1, %v390_v3  ;;  %484 = vmatpush.bf16.msra.mxu1 %v973_v4  ;;  %v976_v21 = vld [vmem:[#allocation2 + $0x8] sm:$0xff]  ;;  %v975_v22 = vld [vmem:[#allocation2] sm:$0xff]  ;;  %v990_v23 = vld [vmem:[#allocation4 + $0x38] sm:$0xff] }
  0x18   : > { %649 = vmatpush.bf16.msra.mxu3 %v990_v23  ;;  %v989_v24 = vld [vmem:[#allocation4 + $0x30] sm:$0xff]  ;;  %v988_v25 = vld [vmem:[#allocation4 + $0x28] sm:$0xff]  ;;  %v987_v26 = vld [vmem:[#allocation4 + $0x20] sm:$0xff] }
  0x19   : > { %567 = vmatpush.bf16.msra.mxu2 %v981_v12  ;;  %v986_v27 = vld [vmem:[#allocation4 + $0x18] sm:$0xff]  ;;  %v985_v28 = vld [vmem:[#allocation4 + $0x10] sm:$0xff]  ;;  %v1030_v29 = vld [vmem:[%s1277_s3] ss:$0 sm:$0xff] }
  0x1a   : > { %v984_v35 = vld [vmem:[#allocation4 + $0x8] sm:$0xff]  ;;  %v983_v36 = vld [vmem:[#allocation4] sm:$0xff]  ;;  %v998_v37 = vld [vmem:[%s1282_s8 + $0x38] sm:$0xff] }
  0x1b   : > { %485 = vmatpush.bf16.msra.mxu1 %v972_v5  ;;  %735 = vmatpush.bf16.msrb.mxu0 %v998_v37  ;;  %v997_v38 = vld [vmem:[%s1282_s8 + $0x30] sm:$0xff]  ;;  %v996_v39 = vld [vmem:[%s1282_s8 + $0x28] sm:$0xff]  ;;  %v995_v40 = vld [vmem:[%s1282_s8 + $0x20] sm:$0xff] }
  0x1c   : > { %650 = vmatpush.bf16.msra.mxu3 %v989_v24  ;;  %v1031_v41 = vld [vmem:[%s1279_s5] ss:$0 sm:$0xff]  ;;  %v994_v47 = vld [vmem:[%s1282_s8 + $0x18] sm:$0xff]  ;;  %v993_v48 = vld [vmem:[%s1282_s8 + $0x10] sm:$0xff] }
  0x1d   : > { %568 = vmatpush.bf16.msra.mxu2 %v980_v13  ;;  %v992_v49 = vld [vmem:[%s1282_s8 + $0x8] sm:$0xff]  ;;  %v991_v50 = vld [vmem:[%s1282_s8] sm:$0xff] }
  0x1e   : > { %v1032_v51 = vld [vmem:[%s1281_s7] ss:$0 sm:$0xff] }
  0x1f   : > { %486 = vmatpush.bf16.msra.mxu1 %v971_v6  ;;  %736 = vmatpush.bf16.msrb.mxu0 %v997_v38  ;;  %v1033_v60 = vld [vmem:[%s1283_s9] ss:$0 sm:$0xff] }
  0x20   : > { %651 = vmatpush.bf16.msra.mxu3 %v988_v25 }
  0x21   : > { %569 = vmatpush.bf16.msra.mxu2 %v979_v14 }
  0x23   : > { %487 = vmatpush.bf16.msra.mxu1 %v970_v7  ;;  %737 = vmatpush.bf16.msrb.mxu0 %v996_v39 }
  0x24   : > { %652 = vmatpush.bf16.msra.mxu3 %v987_v26 }
  0x25   : > { %570 = vmatpush.bf16.msra.mxu2 %v978_v15 }
  0x27   : > { %488 = vmatpush.bf16.msra.mxu1 %v969_v8  ;;  %738 = vmatpush.bf16.msrb.mxu0 %v995_v40 }
  0x28   : > { %653 = vmatpush.bf16.msra.mxu3 %v986_v27 }
  0x29   : > { %571 = vmatpush.bf16.msra.mxu2 %v977_v16 }
  0x2b   : > { %489 = vmatpush.bf16.msra.mxu1 %v968_v9  ;;  %739 = vmatpush.bf16.msrb.mxu0 %v994_v47 }
  0x2c   : > { %654 = vmatpush.bf16.msra.mxu3 %v985_v28 }
  0x2d   : > { %572 = vmatpush.bf16.msra.mxu2 %v976_v21 }
  0x2f   : > { %490 = vmatpush.bf16.msra.mxu1 %v967_v10  ;;  %740 = vmatpush.bf16.msrb.mxu0 %v993_v48 }
  0x30   : > { %655 = vmatpush.bf16.msra.mxu3 %v984_v35 }
  0x31   : > { %573 = vmatpush.bf16.msra.mxu2 %v975_v22 }
  0x33   : > { %741 = vmatpush.bf16.msrb.mxu0 %v992_v49 }
  0x34   : > { %656 = vmatpush.bf16.msra.mxu3 %v983_v36 }
  0x37   : > { %742 = vmatpush.bf16.msrb.mxu0 %v991_v50 }
  0x94   : > { %v409_v17 = vpop.f32.mrf.mxu0 }
  0x95   : > { %v413_v18 = vmax.f32 %v409_v17, 0.0 }
  0x97   : > { %v414_v19 = vpack.c.bf16 %v413_v18, %v413_v18 }
  0x99   : > { %491 = vmatmul.bf16.vlgmr.msra.gmra.mxu1 %v414_v19 }
  0x9c   : > { %v411_v20 = vpop.f32.mrf.mxu0 }
 0x116   : > { %v492_v30 = vpop.f32.mrf.mxu1 }
 0x117   : > { %v493_v31 = vadd.f32 %v1030_v29, %v492_v30 }
 0x119   : > { %v496_v32 = vmax.f32 %v493_v31, 0.0 }
 0x11b   : > { %v497_v33 = vpack.c.bf16 %v496_v32, %v496_v32 }
 0x11d   : > { %574 = vmatmul.bf16.vlgmr.msra.gmra.mxu2 %v497_v33 }
 0x11e   : > { %v494_v34 = vpop.f32.mrf.mxu1 }
 0x1a0   : > { %v575_v42 = vpop.f32.mrf.mxu2 }
 0x1a1   : > { %v576_v43 = vadd.f32 %v1031_v41, %v575_v42 }
 0x1a3   : > { %v579_v44 = vmax.f32 %v576_v43, 0.0 }
 0x1a5   : > { %v580_v45 = vpack.c.bf16 %v579_v44, %v579_v44 }
 0x1a7   : > { %657 = vmatmul.bf16.vlgmr.msra.gmra.mxu3 %v580_v45 }
 0x1a8   : > { %v577_v46 = vpop.f32.mrf.mxu2 }
 0x22a   : > { %v658_v52 = vpop.f32.mrf.mxu3 }
 0x22b   : > { %v659_v53 = vadd.f32 %v1032_v51, %v658_v52 }
 0x22d   : > { %v662_v54 = vmul.f32 0.5, %v659_v53 }
 0x22f   : > { %1034 = vtanh.f32 %v662_v54 }
 0x232   : > { %v660_v55 = vpop.f32.mrf.mxu3 }
 0x235   : > { %v1035_v56 = vpop.eup %1034 }
 0x236   : > { %v664_v57 = vmul.f32 0.5, %v1035_v56 }
 0x238   : > { %v665_v58 = vadd.f32 0.5, %v664_v57 }
 0x23a   : > { %v666_v59 = vpack.c.bf16 %v665_v58, %v665_v58 }
 0x23c   : > { %743 = vmatmul.bf16.vlgmr.msrb.gmra.mxu0 %v666_v59 }
 0x2b9   : > { %v744_v61 = vpop.f32.mrf.mxu0 }
 0x2ba   : > { %v745_v62 = vadd.f32 %v1033_v60, %v744_v61 }
 0x2bc   : > { %749 = vst.msk [vmem:[%s388_s23] sm:$0xff] %vm748_vm2, %v745_v62 }
 0x2c1   : > { %v746_v63 = vpop.f32.mrf.mxu0 }
 0x2c2 PF: > { %s22_s13 = sadd.s32 1, %s1110_s13  }
 0x2c3   : > { %p19_p7 = scmp.ge.s32.totalorder %s22_s13, 4  }
 0x2c5   :  { %21 = sbr.rel (!%p19_p7) target bundleno = 2 (0x2), region = 99 }
 0x2ca   :  { %769 = vsyncpa [#allocation3], 1 }
 0x2cb   :  { %771 = vsyncpa [#allocation3 + $0x1], 1 }
 0x2cc   :  { %772 = vsyncpa [#allocation5], 1 }

</bundles_post_ra>
